<compile_context>
chip_gen: v5e
topology: v5e:2x2
jax: 0.10.0
libtpu: 0.0.40
codegen_flags: <defaults>
</compile_context>

<pallas_src>
import jax
import jax.numpy as jnp
from jax.experimental import pallas as pl
from jax.experimental.pallas import tpu as pltpu

INPUT_SIZE = 2
HIDDEN_SIZE = 4
OUTPUT_SIZE = 1

# Packed-parameter layout (flat f32[17]):
#   w1[i, j] -> i * HIDDEN_SIZE + j            (8 values)
#   b1[j]    -> B1_OFF + j                     (4 values)
#   w2[j, o] -> W2_OFF + j * OUTPUT_SIZE + o   (4 values)
#   b2[o]    -> B2_OFF + o                     (1 value)
B1_OFF = INPUT_SIZE * HIDDEN_SIZE
W2_OFF = B1_OFF + HIDDEN_SIZE
B2_OFF = W2_OFF + HIDDEN_SIZE * OUTPUT_SIZE
N_PARAMS = B2_OFF + OUTPUT_SIZE

SUBLANES = 8
LANES = 128
ALIGN = SUBLANES * LANES          # 1024 batch elements per full (8,128) f32 vreg
TB_MAX = 256 * 1024               # max batch elements per grid step (~2 MiB input)


def _round_up(n, m):
    return ((n + m - 1) // m) * m


def mlp_kernel(params_ref, x_ref, out_ref):
    """params_ref: SMEM f32[17]; x_ref: (INPUT_SIZE, 8, L); out_ref: (OUTPUT_SIZE, 8, L)."""
    xs = [x_ref[i] for i in range(INPUT_SIZE)]     # dense (8, L) feature slabs

    # fc1 + ReLU, fully unrolled as VPU broadcast FMAs (no MXU).
    hs = []
    for j in range(HIDDEN_SIZE):
        s = xs[0] * params_ref[0 * HIDDEN_SIZE + j]
        for i in range(1, INPUT_SIZE):
            s = s + xs[i] * params_ref[i * HIDDEN_SIZE + j]
        hs.append(jnp.maximum(s + params_ref[B1_OFF + j], 0.0))   # (8, L)

    # fc2, unrolled; dense full-vreg output store.
    for o in range(OUTPUT_SIZE):
        y = hs[0] * params_ref[W2_OFF + 0 * OUTPUT_SIZE + o]
        for j in range(1, HIDDEN_SIZE):
            y = y + hs[j] * params_ref[W2_OFF + j * OUTPUT_SIZE + o]
        out_ref[o] = (y + params_ref[B2_OFF + o]).astype(out_ref.dtype)


def _tile_batch(B):
    """Pick (padded batch, tile size, grid steps): big tiles, >=2 even steps (v7x)."""
    Bp = _round_up(max(B, 1), ALIGN)
    g = -(-Bp // TB_MAX)              # steps needed to respect TB_MAX
    if Bp >= 2 * ALIGN:
        g = max(g, 2)                 # feed both v7x TensorCores
    if g > 1 and (g % 2):
        g += 1                        # even split across the two TCs
    tb = _round_up(-(-Bp // g), ALIGN)
    return tb * g, tb, g


def neural_network_forward(x, w1, b1, w2, b2):
    """x: (B, INPUT_SIZE) f32 -> (B, OUTPUT_SIZE) f32.
    Same math as the PyTorch forward: relu(x @ w1 + b1) @ w2 + b2 (weights [in, out])."""
    B = x.shape[0]

    # Pack the 17 parameter scalars into one flat SMEM-resident array.
    params = jnp.concatenate([
        w1.reshape(-1), b1.reshape(-1), w2.reshape(-1), b2.reshape(-1)
    ]).astype(jnp.float32)
    assert params.shape[0] == N_PARAMS

    Bp, TB, g = _tile_batch(B)
    L = Bp // SUBLANES                # total lane columns of the 3D layout
    TL = TB // SUBLANES               # lane columns per grid step (multiple of 128)

    # TODO(synk): this transpose+pad is one extra materializing HBM pass over x;
    # it disappears entirely if the caller supplies x already as (INPUT_SIZE, B).
    xt = jnp.pad(x.astype(jnp.float32).T, ((0, 0), (0, Bp - B)))
    xt = xt.reshape(INPUT_SIZE, SUBLANES, L)   # sublane-dense batch layout (free reshape)

    flops = (2 * INPUT_SIZE * HIDDEN_SIZE + HIDDEN_SIZE
             + 2 * HIDDEN_SIZE * OUTPUT_SIZE + OUTPUT_SIZE) * Bp
    bytes_accessed = 4 * (INPUT_SIZE + OUTPUT_SIZE) * Bp + 4 * N_PARAMS

    out3 = pl.pallas_call(
        mlp_kernel,
        out_shape=jax.ShapeDtypeStruct((OUTPUT_SIZE, SUBLANES, L), jnp.float32),
        grid_spec=pl.GridSpec(
            grid=(g,),
            in_specs=[
                # Packed weights/biases: whole array in SMEM, scalar loads in-kernel.
                pl.BlockSpec(memory_space=pltpu.MemorySpace.SMEM),
                # Activations: batch tiled along the lane axis, all 8 sublanes dense.
                pl.BlockSpec((INPUT_SIZE, SUBLANES, TL), lambda i: (0, 0, i)),
            ],
            out_specs=pl.BlockSpec((OUTPUT_SIZE, SUBLANES, TL), lambda i: (0, 0, i)),
        ),
        compiler_params=pltpu.CompilerParams(
            dimension_semantics=("parallel",)),     # shard batch steps across TCs (v7x)
        cost_estimate=pl.CostEstimate(
            flops=flops, transcendentals=0, bytes_accessed=bytes_accessed),
    )(params, xt)

    # (OUTPUT_SIZE, 8, L) -> (OUTPUT_SIZE, Bp) -> slice -> (B, OUTPUT_SIZE); all copy-free.
    return out3.reshape(OUTPUT_SIZE, Bp)[:, :B].T


def init_params(key):
    """Deterministic init mimicking nn.Linear's uniform(-1/sqrt(fan_in), +)."""
    k1, k2, k3, k4 = jax.random.split(key, 4)
    lim1 = 1.0 / jnp.sqrt(jnp.float32(INPUT_SIZE))
    lim2 = 1.0 / jnp.sqrt(jnp.float32(HIDDEN_SIZE))
    w1 = jax.random.uniform(k1, (INPUT_SIZE, HIDDEN_SIZE), jnp.float32, -lim1, lim1)
    b1 = jax.random.uniform(k2, (1, HIDDEN_SIZE), jnp.float32, -lim1, lim1)
    w2 = jax.random.uniform(k3, (HIDDEN_SIZE, OUTPUT_SIZE), jnp.float32, -lim2, lim2)
    b2 = jax.random.uniform(k4, (1, OUTPUT_SIZE), jnp.float32, -lim2, lim2)
    return w1, b1, w2, b2


if __name__ == "__main__":
    key = jax.random.PRNGKey(0)
    kx, kp = jax.random.split(key)
    w1, b1, w2, b2 = init_params(kp)

    def ref_forward(xv):
        # Pure-JAX reference (same math as the PyTorch forward), f32 accumulation.
        h = jnp.maximum(jnp.dot(xv, w1, precision=jax.lax.Precision.HIGHEST) + b1, 0.0)
        return jnp.dot(h, w2, precision=jax.lax.Precision.HIGHEST) + b2

    # Cover: tiny batch, batch not a multiple of 8/128 (pad path),
    # and a batch large enough for a multi-step "parallel" grid.
    for batch in (8, 1000, 3000):
        xb = jax.random.normal(jax.random.fold_in(kx, batch),
                               (batch, INPUT_SIZE), jnp.float32)
        out = jax.block_until_ready(neural_network_forward(xb, w1, b1, w2, b2))
        ref = ref_forward(xb)
        assert out.shape == (batch, OUTPUT_SIZE)
        assert jnp.allclose(out, ref, atol=1e-5, rtol=1e-5), f"mismatch at batch={batch}"

    print("KERNEL_OK")
</pallas_src>

<mosaic_0001>
module attributes {stable_mosaic.version = 11 : i64} {
  func.func @mlp_kernel(%arg0: i32, %arg1: memref<17xf32, #tpu.memory_space<smem>>, %arg2: memref<2x8x128xf32, #tpu.memory_space<vmem>>, %arg3: memref<1x8x128xf32, #tpu.memory_space<vmem>>) attributes {dimension_semantics = [#tpu.dimension_semantics<parallel>], iteration_bounds = array<i64: 1>, scalar_prefetch = 0 : i64, scratch_operands = 0 : i64, tpu.core_type = #tpu.core_type<tc>, window_params = [{transform_indices = @transform_0, window_bounds = array<i64: 17>}, {transform_indices = @transform_1, window_bounds = array<i64: 2, 8, 128>}, {transform_indices = @transform_2, window_bounds = array<i64: 1, 8, 128>}]} {
    %c0 = arith.constant 0 : index
    %c0_0 = arith.constant 0 : index
    %c0_1 = arith.constant 0 : index
    %0 = vector.load %arg2[%c0, %c0_0, %c0_1] : memref<2x8x128xf32, #tpu.memory_space<vmem>>, vector<1x8x128xf32>
    %1 = vector.shape_cast %0 : vector<1x8x128xf32> to vector<8x128xf32>
    %c1 = arith.constant 1 : index
    %c0_2 = arith.constant 0 : index
    %c0_3 = arith.constant 0 : index
    %2 = vector.load %arg2[%c1, %c0_2, %c0_3] : memref<2x8x128xf32, #tpu.memory_space<vmem>>, vector<1x8x128xf32>
    %3 = vector.shape_cast %2 : vector<1x8x128xf32> to vector<8x128xf32>
    %c0_4 = arith.constant 0 : index
    %4 = memref.load %arg1[%c0_4] : memref<17xf32, #tpu.memory_space<smem>>
    %5 = vector.broadcast %4 : f32 to vector<8x128xf32>
    %6 = arith.mulf %1, %5 : vector<8x128xf32>
    %c4 = arith.constant 4 : index
    %7 = memref.load %arg1[%c4] : memref<17xf32, #tpu.memory_space<smem>>
    %8 = vector.broadcast %7 : f32 to vector<8x128xf32>
    %9 = arith.mulf %3, %8 : vector<8x128xf32>
    %10 = arith.addf %6, %9 : vector<8x128xf32>
    %c8 = arith.constant 8 : index
    %11 = memref.load %arg1[%c8] : memref<17xf32, #tpu.memory_space<smem>>
    %12 = vector.broadcast %11 : f32 to vector<8x128xf32>
    %13 = arith.addf %10, %12 : vector<8x128xf32>
    %cst = arith.constant 0.000000e+00 : f32
    %14 = vector.broadcast %cst : f32 to vector<8x128xf32>
    %15 = arith.maximumf %13, %14 : vector<8x128xf32>
    %c1_5 = arith.constant 1 : index
    %16 = memref.load %arg1[%c1_5] : memref<17xf32, #tpu.memory_space<smem>>
    %17 = vector.broadcast %16 : f32 to vector<8x128xf32>
    %18 = arith.mulf %1, %17 : vector<8x128xf32>
    %c5 = arith.constant 5 : index
    %19 = memref.load %arg1[%c5] : memref<17xf32, #tpu.memory_space<smem>>
    %20 = vector.broadcast %19 : f32 to vector<8x128xf32>
    %21 = arith.mulf %3, %20 : vector<8x128xf32>
    %22 = arith.addf %18, %21 : vector<8x128xf32>
    %c9 = arith.constant 9 : index
    %23 = memref.load %arg1[%c9] : memref<17xf32, #tpu.memory_space<smem>>
    %24 = vector.broadcast %23 : f32 to vector<8x128xf32>
    %25 = arith.addf %22, %24 : vector<8x128xf32>
    %cst_6 = arith.constant 0.000000e+00 : f32
    %26 = vector.broadcast %cst_6 : f32 to vector<8x128xf32>
    %27 = arith.maximumf %25, %26 : vector<8x128xf32>
    %c2 = arith.constant 2 : index
    %28 = memref.load %arg1[%c2] : memref<17xf32, #tpu.memory_space<smem>>
    %29 = vector.broadcast %28 : f32 to vector<8x128xf32>
    %30 = arith.mulf %1, %29 : vector<8x128xf32>
    %c6 = arith.constant 6 : index
    %31 = memref.load %arg1[%c6] : memref<17xf32, #tpu.memory_space<smem>>
    %32 = vector.broadcast %31 : f32 to vector<8x128xf32>
    %33 = arith.mulf %3, %32 : vector<8x128xf32>
    %34 = arith.addf %30, %33 : vector<8x128xf32>
    %c10 = arith.constant 10 : index
    %35 = memref.load %arg1[%c10] : memref<17xf32, #tpu.memory_space<smem>>
    %36 = vector.broadcast %35 : f32 to vector<8x128xf32>
    %37 = arith.addf %34, %36 : vector<8x128xf32>
    %cst_7 = arith.constant 0.000000e+00 : f32
    %38 = vector.broadcast %cst_7 : f32 to vector<8x128xf32>
    %39 = arith.maximumf %37, %38 : vector<8x128xf32>
    %c3 = arith.constant 3 : index
    %40 = memref.load %arg1[%c3] : memref<17xf32, #tpu.memory_space<smem>>
    %41 = vector.broadcast %40 : f32 to vector<8x128xf32>
    %42 = arith.mulf %1, %41 : vector<8x128xf32>
    %c7 = arith.constant 7 : index
    %43 = memref.load %arg1[%c7] : memref<17xf32, #tpu.memory_space<smem>>
    %44 = vector.broadcast %43 : f32 to vector<8x128xf32>
    %45 = arith.mulf %3, %44 : vector<8x128xf32>
    %46 = arith.addf %42, %45 : vector<8x128xf32>
    %c11 = arith.constant 11 : index
    %47 = memref.load %arg1[%c11] : memref<17xf32, #tpu.memory_space<smem>>
    %48 = vector.broadcast %47 : f32 to vector<8x128xf32>
    %49 = arith.addf %46, %48 : vector<8x128xf32>
    %cst_8 = arith.constant 0.000000e+00 : f32
    %50 = vector.broadcast %cst_8 : f32 to vector<8x128xf32>
    %51 = arith.maximumf %49, %50 : vector<8x128xf32>
    %c12 = arith.constant 12 : index
    %52 = memref.load %arg1[%c12] : memref<17xf32, #tpu.memory_space<smem>>
    %53 = vector.broadcast %52 : f32 to vector<8x128xf32>
    %54 = arith.mulf %15, %53 : vector<8x128xf32>
    %c13 = arith.constant 13 : index
    %55 = memref.load %arg1[%c13] : memref<17xf32, #tpu.memory_space<smem>>
    %56 = vector.broadcast %55 : f32 to vector<8x128xf32>
    %57 = arith.mulf %27, %56 : vector<8x128xf32>
    %58 = arith.addf %54, %57 : vector<8x128xf32>
    %c14 = arith.constant 14 : index
    %59 = memref.load %arg1[%c14] : memref<17xf32, #tpu.memory_space<smem>>
    %60 = vector.broadcast %59 : f32 to vector<8x128xf32>
    %61 = arith.mulf %39, %60 : vector<8x128xf32>
    %62 = arith.addf %58, %61 : vector<8x128xf32>
    %c15 = arith.constant 15 : index
    %63 = memref.load %arg1[%c15] : memref<17xf32, #tpu.memory_space<smem>>
    %64 = vector.broadcast %63 : f32 to vector<8x128xf32>
    %65 = arith.mulf %51, %64 : vector<8x128xf32>
    %66 = arith.addf %62, %65 : vector<8x128xf32>
    %c16 = arith.constant 16 : index
    %67 = memref.load %arg1[%c16] : memref<17xf32, #tpu.memory_space<smem>>
    %68 = vector.broadcast %67 : f32 to vector<8x128xf32>
    %69 = arith.addf %66, %68 : vector<8x128xf32>
    %c0_9 = arith.constant 0 : index
    %c0_10 = arith.constant 0 : index
    %c0_11 = arith.constant 0 : index
    %70 = vector.load %arg3[%c0_9, %c0_10, %c0_11] : memref<1x8x128xf32, #tpu.memory_space<vmem>>, vector<1x8x128xf32>
    %71 = vector.shape_cast %70 : vector<1x8x128xf32> to vector<8x128xf32>
    %72 = vector.shape_cast %69 : vector<8x128xf32> to vector<1x8x128xf32>
    tpu.vector_store %arg3[%c0_9, %c0_10, %c0_11], %72 {strides = array<i32>} : memref<1x8x128xf32, #tpu.memory_space<vmem>>, vector<1x8x128xf32>,
    return
  }
  func.func @transform_0(%arg0: i32) -> i32 {
    %c0_i32 = arith.constant 0 : i32
    %c0_i32_0 = arith.constant 0 : i32
    return %c0_i32 : i32
  }
  func.func @transform_1(%arg0: i32) -> (i32, i32, i32) {
    %c0_i32 = arith.constant 0 : i32
    %c0_i32_0 = arith.constant 0 : i32
    %c0_i32_1 = arith.constant 0 : i32
    return %c0_i32, %c0_i32_0, %arg0 : i32, i32, i32
  }
  func.func @transform_2(%arg0: i32) -> (i32, i32, i32) {
    %c0_i32 = arith.constant 0 : i32
    %c0_i32_0 = arith.constant 0 : i32
    %c0_i32_1 = arith.constant 0 : i32
    return %c0_i32, %c0_i32_0, %arg0 : i32, i32, i32
  }
}

</mosaic_0001>

<bundles_post_ra>
// kernel: tpu_custom_call.1
= control target key start
LH: loop header
LB: loop body
LE: loop exit
PB: predicated region body
PF: predicated region fallthrough
CT: control target
= control target key end

     0   :  { %7 = vsyncpa [#allocation5], 0  ;;  %s244_s0 = inlined_call_operand.hbm [shape: f32[17], index: 0, kind: input, shape index: {}]   ;;  %s245_s1 = inlined_call_operand.hbm [shape: f32[2,8,128], index: 1, kind: input, shape index: {}]   ;;  %s246_s2 = inlined_call_operand.hbm [shape: f32[1,8,128], index: 2, kind: output, shape index: {}]  }
   0x1   :  { %8 = vsyncpa [#allocation3], 0 }
   0x2   :  { %9 = vsyncpa [#allocation4], 0  ;;  %s15_s11 = sshll.u32 %s244_s0, 4  ;;  %s23_s14 = sshll.u32 %s245_s1, 4  ;;  %s16_s11 = int_to_ptr.hbm [resolvable:$true] %s15_s11  ;;  %s24_s14 = int_to_ptr.hbm [resolvable:$true] %s23_s14 }
   0x3   :  { %s212_s15 = smov [#allocation2]   ;;  %s213_s16 = smov [#allocation6]  }
   0x4   :  { %18 = dma.hbm_to_smem %s16_s11, 16, %s212_s15, [#allocation5]  }
   0x5   :  { %s25_s17 = sshll.u32 %s213_s16, 4  ;;  %s214_s18 = smov 128   ;;  %s26_s17 = int_to_ptr.vmem [resolvable:$true] %s25_s17 }
   0x6   :  { %s215_s19 = smov 8  }
   0x7   :  { %31 = dma.hbm_to_vmem [thread:$0]  %s24_s14, 256, %s26_s17, [#allocation3], %s214_s18, %s214_s18, %s215_s19  }
   0x8   :  { %206 = dma.done.wait [#allocation5], 16  }
   0x9   :  { %207 = vsyncadd [#allocation5], 4294967280 }
   0xa   :  { %208 = dma.done.wait [#allocation3], 256  }
   0xb   :  { %209 = vsyncadd [#allocation3], 4294967040 }
   0xc   :  { %40 = sfence }
   0xd   :  { %s44_s0 = sld [smem:[#allocation2]]  ;;  %v41_v0 = vld [vmem:[#allocation6] sm:$0xff]  ;;  %v43_v1 = vld [vmem:[#allocation6 + $0x8] sm:$0xff]  ;;  %s216_s7 = smov [#allocation7]  }
   0xe   :  { %s125_s20 = sld [smem:[#allocation2 + $0x4]]  ;;  %s112_s8 = sshll.u32 %s216_s7, 4  ;;  %s113_s8 = int_to_ptr.vmem [resolvable:$true] %s112_s8 }
   0xf   :  { %s126_s21 = sld [smem:[#allocation2 + $0x8]]  ;;  %s114_s11 = sshll.u32 %s246_s2, 4  ;;  %s115_s11 = int_to_ptr.hbm [resolvable:$true] %s114_s11 }
  0x10   :  { %s127_s22 = sld [smem:[#allocation2 + $0x1]] }
  0x11   :  { %s128_s1 = sld [smem:[#allocation2 + $0x5]] }
  0x12   :  { %s129_s23 = sld [smem:[#allocation2 + $0x9]] }
  0x13   :  { %v45_v2 = vstv %s44_s0  ;;  %s130_s24 = sld [smem:[#allocation2 + $0x2]] }
  0x14   :  { %v46_v3 = vmul.f32 %v45_v2, %v41_v0  ;;  %v48_v4 = vstv %s125_s20  ;;  %s131_s25 = sld [smem:[#allocation2 + $0x6]] }
  0x15   :  { %v49_v5 = vmul.f32 %v48_v4, %v43_v1  ;;  %s132_s26 = sld [smem:[#allocation2 + $0xa]]  ;;  %v52_v6 = vstv %s126_s21 }
  0x16   :  { %v56_v7 = vstv %s127_s22  ;;  %s133_s27 = sld [smem:[#allocation2 + $0x3]] }
  0x17   :  { %v50_v8 = vadd.f32 %v49_v5, %v46_v3  ;;  %v57_v9 = vmul.f32 %v56_v7, %v41_v0  ;;  %v59_v10 = vstv %s128_s1  ;;  %s134_s28 = sld [smem:[#allocation2 + $0x7]] }
  0x18   :  { %v60_v11 = vmul.f32 %v59_v10, %v43_v1  ;;  %s238_s29 = sld [smem:[#allocation2 + $0xb]]  ;;  %v63_v13 = vstv %s129_s23 }
  0x19   :  { %v53_v12 = vadd.f32 %v52_v6, %v50_v8  ;;  %v67_v14 = vstv %s130_s24  ;;  %s136_s30 = sld [smem:[#allocation2 + $0xc]] }
  0x1a   :  { %v61_v15 = vadd.f32 %v60_v11, %v57_v9  ;;  %v68_v16 = vmul.f32 %v67_v14, %v41_v0  ;;  %v70_v17 = vstv %s131_s25  ;;  %s137_s3 = sld [smem:[#allocation2 + $0xd]] }
  0x1b   :  { %v71_v18 = vmul.f32 %v70_v17, %v43_v1  ;;  %s138_s4 = sld [smem:[#allocation2 + $0xe]]  ;;  %v54_v19 = vmax.f32 %v53_v12, 0.0  ;;  %v74_v21 = vstv %s132_s26 }
  0x1c   :  { %v64_v20 = vadd.f32 %v63_v13, %v61_v15  ;;  %v78_v22 = vstv %s133_s27  ;;  %s139_s5 = sld [smem:[#allocation2 + $0xf]] }
  0x1d   :  { %v72_v23 = vadd.f32 %v71_v18, %v68_v16  ;;  %v79_v24 = vmul.f32 %v78_v22, %v41_v0  ;;  %v81_v25 = vstv %s134_s28  ;;  %s140_s6 = sld [smem:[#allocation2 + $0x10]] }
  0x1e   :  { %v65_v26 = vmax.f32 %v64_v20, 0.0  ;;  %v82_v27 = vmul.f32 %v81_v25, %v43_v1  ;;  %v85_v29 = vstv %s238_s29 }
  0x1f   :  { %v75_v28 = vadd.f32 %v74_v21, %v72_v23  ;;  %v89_v30 = vstv %s136_s30 }
  0x20   :  { %v83_v31 = vadd.f32 %v82_v27, %v79_v24  ;;  %v90_v32 = vmul.f32 %v89_v30, %v54_v19  ;;  %v92_v33 = vstv %s137_s3 }
  0x21   :  { %v76_v34 = vmax.f32 %v75_v28, 0.0  ;;  %v93_v35 = vmul.f32 %v92_v33, %v65_v26  ;;  %v96_v36 = vstv %s138_s4 }
  0x22   :  { %v86_v37 = vadd.f32 %v85_v29, %v83_v31  ;;  %v100_v40 = vstv %s139_s5 }
  0x23   :  { %v94_v38 = vadd.f32 %v93_v35, %v90_v32  ;;  %v97_v39 = vmul.f32 %v96_v36, %v76_v34  ;;  %v104_v44 = vstv %s140_s6 }
  0x24   :  { %v87_v41 = vmax.f32 %v86_v37, 0.0 }
  0x25   :  { %v98_v42 = vadd.f32 %v97_v39, %v94_v38 }
  0x26   :  { %v101_v43 = vmul.f32 %v100_v40, %v87_v41 }
  0x28   :  { %v102_v45 = vadd.f32 %v101_v43, %v98_v42 }
  0x2a   :  { %v105_v46 = vadd.f32 %v104_v44, %v102_v45 }
  0x2c   :  { %106 = vst [vmem:[#allocation7] sm:$0xff] %v105_v46 }
  0x2d   :  { %117 = dma.vmem_to_hbm [thread:$0]  %s113_s8, 128, %s115_s11, [#allocation4]  }
  0x2e   :  { %210 = dma.done.wait [#allocation4], 128  }
  0x2f   :  { %211 = vsyncadd [#allocation4], 4294967168 }
  0x30   :  { %122 = vsyncpa [#allocation3], 1 }
  0x31   :  { %123 = vsyncpa [#allocation4], 1 }
  0x32   :  { %124 = vsyncpa [#allocation5], 1 }

</bundles_post_ra>
